<compile_context>
chip_gen: v5e
topology: v5e:2x2
jax: 0.10.0
libtpu: 0.0.40
codegen_flags: <defaults>
</compile_context>

<pallas_src>
import math
import functools

import jax
import jax.numpy as jnp
import numpy as np
from jax.experimental import pallas as pl
from jax.experimental.pallas import tpu as pltpu

# ----------------------------- config (small, deterministic) ------------------
BATCH = 2
N_CTX = 8
WIDTH = 32
HEADS = 4
ATTN_CH = WIDTH // HEADS           # 8
QKV_BIAS = True
INIT_SCALE = 0.25

LANE = 128                         # TPU vreg lane width


def _round_up(v, m):
    return (v + m - 1) // m * m


# ----------------------------- Pallas kernel ----------------------------------
def mha_kernel(x_ref, wqkv_ref, wproj_ref, bproj_ref, o_ref, *, heads, attn_ch):
    # x_ref:     (T, Wp)    one batch element; feature lanes zero-padded to 128,
    #                       lane `width` carries a constant 1.0 (bias lane)
    # wqkv_ref:  (Wp, Qp)   dense QKV weight, columns ordered [q|k|v] group-major,
    #                       head-major, channel-minor; softmax scale folded into
    #                       the q/k groups; bias folded into row `width`
    # wproj_ref: (H*C, Wo)  c_proj^T with output lanes zero-padded to 128
    # bproj_ref: (1, Wo)
    # o_ref:     (T, Wo)
    hc = heads * attn_ch
    x = x_ref[...]                                                   # (T, Wp) dense load

    # --- fused QKV projection: ONE dense MXU matmul (bias via the 1.0 lane) ---
    qkv = jnp.dot(x, wqkv_ref[...],
                  preferred_element_type=jnp.float32)                # (T, Qp)

    # --- head split: static 8-lane slices stacked on a free leading axis ------
    def split(base):
        return jnp.stack(
            [qkv[:, base + h * attn_ch: base + (h + 1) * attn_ch]
             for h in range(heads)], axis=0)                         # (H, T, C)

    q = split(0)
    k = split(hc)
    v = split(2 * hc)

    # --- attention scores: batched q @ k^T, contracting the channel axis ------
    s = jnp.einsum('htc,hsc->hts', q, k,
                   preferred_element_type=jnp.float32)               # (H, T, T)

    # --- softmax over the key axis, in float32 (as in the reference) ----------
    m = jnp.max(s, axis=-1, keepdims=True)
    e = jnp.exp(s - m)
    l = jnp.sum(e, axis=-1, keepdims=True)
    p = e * pl.reciprocal(l, approx=False)                           # (H, T, T)

    # --- attention output: batched p @ v ---------------------------------------
    oh = jnp.einsum('hts,hsc->htc', p, v,
                    preferred_element_type=jnp.float32)              # (H, T, C)

    # --- fused c_proj: lane-concat heads, one K=H*C matmul, dense 128-lane store
    oc = jnp.concatenate([oh[h] for h in range(heads)], axis=-1)     # (T, H*C)
    y = jnp.dot(oc, wproj_ref[...],
                preferred_element_type=jnp.float32) + bproj_ref[...]
    o_ref[...] = y.astype(o_ref.dtype)


# ----------------------------- wrapper -----------------------------------------
def multihead_attention(x, w_qkv, b_qkv, w_proj, b_proj, *, heads):
    """Forward of MultiheadAttention (qkv_fuse=True).

    x: (B, T, W).  w_qkv: (3W, W), b_qkv: (3W,), w_proj: (W, W), b_proj: (W,)
    in torch nn.Linear layout (y = x @ W.T + b).
    """
    bs, n_ctx, width = x.shape
    attn_ch = width // heads
    hc = heads * attn_ch                                   # == width
    scale = 1.0 / math.sqrt(math.sqrt(attn_ch))
    wpad = _round_up(width + 1, LANE)                      # input lanes (+ bias lane)
    qkv_cols = _round_up(3 * hc, LANE)                     # QKV output lanes
    wout = _round_up(width, LANE)                          # output lanes

    # --- host-side prep: c_qkv rows -> [q|k|v]-group, head-major, channel-minor
    # torch row index r = h*3C + sub, sub in [0,C)=q, [C,2C)=k, [2C,3C)=v
    w3 = jnp.asarray(w_qkv).reshape(heads, 3 * attn_ch, width)
    b3 = jnp.asarray(b_qkv).reshape(heads, 3 * attn_ch)
    wq = w3[:, :attn_ch] * scale                           # (H, C, W), scale folded
    wk = w3[:, attn_ch:2 * attn_ch] * scale
    wv = w3[:, 2 * attn_ch:]
    bq = b3[:, :attn_ch] * scale                           # (H, C), scale folded
    bk = b3[:, attn_ch:2 * attn_ch] * scale
    bv = b3[:, 2 * attn_ch:]

    w_cols = jnp.concatenate([wq.reshape(hc, width),
                              wk.reshape(hc, width),
                              wv.reshape(hc, width)], axis=0)        # (3HC, W)
    b_cols = jnp.concatenate([bq.reshape(hc),
                              bk.reshape(hc),
                              bv.reshape(hc)], axis=0)               # (3HC,)

    # dense (Wp, Qp) QKV weight: rows 0..W-1 = weights, row W = bias, rest zero
    w_all = jnp.zeros((wpad, qkv_cols), jnp.float32)
    w_all = w_all.at[:width, :3 * hc].set(w_cols.T)
    w_all = w_all.at[width, :3 * hc].set(b_cols)

    # fused c_proj: (H*C, Wo) = w_proj.T, output lanes zero-padded to 128
    wp = jnp.zeros((hc, wout), jnp.float32).at[:, :width].set(jnp.asarray(w_proj).T)
    bp = jnp.zeros((1, wout), jnp.float32).at[0, :width].set(jnp.asarray(b_proj))

    # tokens: rows = B*T, feature lanes padded to 128, bias lane set to 1.0
    x_pad = jnp.zeros((bs * n_ctx, wpad), x.dtype)
    x_pad = x_pad.at[:, :width].set(x.reshape(bs * n_ctx, width))
    x_pad = x_pad.at[:, width].set(1.0)

    kernel = functools.partial(mha_kernel, heads=heads, attn_ch=attn_ch)

    out = pl.pallas_call(
        kernel,
        out_shape=jax.ShapeDtypeStruct((bs * n_ctx, wout), x.dtype),
        grid_spec=pltpu.PrefetchScalarGridSpec(
            num_scalar_prefetch=0,
            grid=(bs,),                                    # one step per batch element
            in_specs=[
                pl.BlockSpec((n_ctx, wpad), lambda b: (b, 0)),
                pl.BlockSpec((wpad, qkv_cols), lambda b: (0, 0)),
                pl.BlockSpec((hc, wout), lambda b: (0, 0)),
                pl.BlockSpec((1, wout), lambda b: (0, 0)),
            ],
            out_specs=pl.BlockSpec((n_ctx, wout), lambda b: (b, 0)),
        ),
        compiler_params=pltpu.CompilerParams(
            dimension_semantics=("parallel",),             # sharded across TCs on v7x
        ),
    )(x_pad, w_all, wp, bp)

    # un-pad and restore (B, T, W) outside the kernel
    return out[:, :width].reshape(bs, n_ctx, width)


# ----------------------------- pure-JAX reference ------------------------------
def reference(x, w_qkv, b_qkv, w_proj, b_proj, *, heads):
    bs, n_ctx, width = x.shape
    attn_ch = width // heads
    scale = 1.0 / math.sqrt(math.sqrt(attn_ch))
    qkv = x @ w_qkv.T + b_qkv                              # (B, T, 3W)
    qkv = qkv.reshape(bs, n_ctx, heads, 3 * attn_ch)
    q, k, v = (qkv[..., :attn_ch], qkv[..., attn_ch:2 * attn_ch],
               qkv[..., 2 * attn_ch:])
    w = jnp.einsum('bthc,bshc->bhts', q * scale, k * scale)
    w = jax.nn.softmax(w.astype(jnp.float32), axis=-1).astype(w.dtype)
    out = jnp.einsum('bhts,bshc->bthc', w, v).reshape(bs, n_ctx, width)
    return out @ w_proj.T + b_proj


# ----------------------------- main --------------------------------------------
if __name__ == "__main__":
    key = jax.random.PRNGKey(0)
    kx, kwq, kbq, kwp, kbp = jax.random.split(key, 5)

    x = jax.random.normal(kx, (BATCH, N_CTX, WIDTH), dtype=jnp.float32)

    # Deterministic synthetic parameters (init_linear ~ scaled normal init).
    w_qkv = jax.random.normal(kwq, (3 * WIDTH, WIDTH), dtype=jnp.float32) * INIT_SCALE
    b_qkv = (jax.random.normal(kbq, (3 * WIDTH,), dtype=jnp.float32) * 0.01
             if QKV_BIAS else jnp.zeros((3 * WIDTH,), jnp.float32))
    w_proj = jax.random.normal(kwp, (WIDTH, WIDTH), dtype=jnp.float32) * INIT_SCALE
    b_proj = jax.random.normal(kbp, (WIDTH,), dtype=jnp.float32) * 0.01

    out = multihead_attention(x, w_qkv, b_qkv, w_proj, b_proj, heads=HEADS)
    out = jax.block_until_ready(out)

    ref = reference(x, w_qkv, b_qkv, w_proj, b_proj, heads=HEADS)
    np.testing.assert_allclose(np.asarray(out), np.asarray(ref), rtol=1e-4, atol=1e-4)

    print("KERNEL_OK")
</pallas_src>

<mosaic_0001>
module attributes {stable_mosaic.version = 11 : i64} {
  func.func @mha_kernel(%arg0: i32, %arg1: memref<8x128xf32, #tpu.memory_space<vmem>>, %arg2: memref<128x128xf32, #tpu.memory_space<vmem>>, %arg3: memref<32x128xf32, #tpu.memory_space<vmem>>, %arg4: memref<1x128xf32, #tpu.memory_space<vmem>>, %arg5: memref<8x128xf32, #tpu.memory_space<vmem>>) attributes {dimension_semantics = [#tpu.dimension_semantics<parallel>], iteration_bounds = array<i64: 2>, scalar_prefetch = 0 : i64, scratch_operands = 0 : i64, tpu.core_type = #tpu.core_type<tc>, window_params = [{transform_indices = @transform_0, window_bounds = array<i64: 8, 128>}, {pipeline_mode = #tpu.pipeline_mode<synchronous>, transform_indices = @transform_1, window_bounds = array<i64: 128, 128>}, {pipeline_mode = #tpu.pipeline_mode<synchronous>, transform_indices = @transform_2, window_bounds = array<i64: 32, 128>}, {pipeline_mode = #tpu.pipeline_mode<synchronous>, transform_indices = @transform_3, window_bounds = array<i64: 1, 128>}, {transform_indices = @transform_4, window_bounds = array<i64: 8, 128>}]} {
    %c0 = arith.constant 0 : index
    %c0_0 = arith.constant 0 : index
    %0 = vector.load %arg1[%c0, %c0_0] : memref<8x128xf32, #tpu.memory_space<vmem>>, vector<8x128xf32>
    %c0_1 = arith.constant 0 : index
    %c0_2 = arith.constant 0 : index
    %1 = vector.load %arg2[%c0_1, %c0_2] : memref<128x128xf32, #tpu.memory_space<vmem>>, vector<128x128xf32>
    %cst = arith.constant dense<0.000000e+00> : vector<8x128xf32>
    %2 = tpu.matmul %0, %1, %cst {dimension_numbers = #tpu.dot_dimension_numbers<[1], [0], [0], [1], [0, 0, 1, 1], [], []>} : vector<8x128xf32>, vector<128x128xf32>, vector<8x128xf32> -> vector<8x128xf32>
    %3 = vector.extract_strided_slice %2 {offsets = [0, 0], sizes = [8, 8], strides = [1, 1]} : vector<8x128xf32> to vector<8x8xf32>
    %4 = vector.extract_strided_slice %2 {offsets = [0, 8], sizes = [8, 8], strides = [1, 1]} : vector<8x128xf32> to vector<8x8xf32>
    %5 = vector.extract_strided_slice %2 {offsets = [0, 16], sizes = [8, 8], strides = [1, 1]} : vector<8x128xf32> to vector<8x8xf32>
    %6 = vector.extract_strided_slice %2 {offsets = [0, 24], sizes = [8, 8], strides = [1, 1]} : vector<8x128xf32> to vector<8x8xf32>
    %7 = vector.shape_cast %3 : vector<8x8xf32> to vector<1x8x8xf32>
    %8 = vector.shape_cast %4 : vector<8x8xf32> to vector<1x8x8xf32>
    %9 = vector.shape_cast %5 : vector<8x8xf32> to vector<1x8x8xf32>
    %10 = vector.shape_cast %6 : vector<8x8xf32> to vector<1x8x8xf32>
    %11 = tpu.concatenate %7, %8, %9, %10 in 0 : vector<1x8x8xf32>, vector<1x8x8xf32>, vector<1x8x8xf32>, vector<1x8x8xf32> -> vector<4x8x8xf32>
    %12 = vector.extract_strided_slice %2 {offsets = [0, 32], sizes = [8, 8], strides = [1, 1]} : vector<8x128xf32> to vector<8x8xf32>
    %13 = vector.extract_strided_slice %2 {offsets = [0, 40], sizes = [8, 8], strides = [1, 1]} : vector<8x128xf32> to vector<8x8xf32>
    %14 = vector.extract_strided_slice %2 {offsets = [0, 48], sizes = [8, 8], strides = [1, 1]} : vector<8x128xf32> to vector<8x8xf32>
    %15 = vector.extract_strided_slice %2 {offsets = [0, 56], sizes = [8, 8], strides = [1, 1]} : vector<8x128xf32> to vector<8x8xf32>
    %16 = vector.shape_cast %12 : vector<8x8xf32> to vector<1x8x8xf32>
    %17 = vector.shape_cast %13 : vector<8x8xf32> to vector<1x8x8xf32>
    %18 = vector.shape_cast %14 : vector<8x8xf32> to vector<1x8x8xf32>
    %19 = vector.shape_cast %15 : vector<8x8xf32> to vector<1x8x8xf32>
    %20 = tpu.concatenate %16, %17, %18, %19 in 0 : vector<1x8x8xf32>, vector<1x8x8xf32>, vector<1x8x8xf32>, vector<1x8x8xf32> -> vector<4x8x8xf32>
    %21 = vector.extract_strided_slice %2 {offsets = [0, 64], sizes = [8, 8], strides = [1, 1]} : vector<8x128xf32> to vector<8x8xf32>
    %22 = vector.extract_strided_slice %2 {offsets = [0, 72], sizes = [8, 8], strides = [1, 1]} : vector<8x128xf32> to vector<8x8xf32>
    %23 = vector.extract_strided_slice %2 {offsets = [0, 80], sizes = [8, 8], strides = [1, 1]} : vector<8x128xf32> to vector<8x8xf32>
    %24 = vector.extract_strided_slice %2 {offsets = [0, 88], sizes = [8, 8], strides = [1, 1]} : vector<8x128xf32> to vector<8x8xf32>
    %25 = vector.shape_cast %21 : vector<8x8xf32> to vector<1x8x8xf32>
    %26 = vector.shape_cast %22 : vector<8x8xf32> to vector<1x8x8xf32>
    %27 = vector.shape_cast %23 : vector<8x8xf32> to vector<1x8x8xf32>
    %28 = vector.shape_cast %24 : vector<8x8xf32> to vector<1x8x8xf32>
    %29 = tpu.concatenate %25, %26, %27, %28 in 0 : vector<1x8x8xf32>, vector<1x8x8xf32>, vector<1x8x8xf32>, vector<1x8x8xf32> -> vector<4x8x8xf32>
    "tpu.trace_start"() <{level = 10 : i32, message = "htc,hsc->hts"}> : () -> ()
    %cst_3 = arith.constant dense<0.000000e+00> : vector<4x8x8xf32>
    %30 = tpu.matmul %11, %20, %cst_3 {dimension_numbers = #tpu.dot_dimension_numbers<[2], [2], [1], [1], [0, 0, 0, 1, 1, 1], [0], [0]>} : vector<4x8x8xf32>, vector<4x8x8xf32>, vector<4x8x8xf32> -> vector<4x8x8xf32>
    "tpu.trace_stop"() : () -> ()
    %cst_4 = arith.constant dense<0xFF800000> : vector<4x8xf32>
    %31 = vector.multi_reduction <maximumf>, %30, %cst_4 [2] : vector<4x8x8xf32> to vector<4x8xf32>
    %32 = vector.shape_cast %31 : vector<4x8xf32> to vector<4x8x1xf32>
    %33 = vector.broadcast %32 : vector<4x8x1xf32> to vector<4x8x8xf32>
    %34 = arith.subf %30, %33 : vector<4x8x8xf32>
    %35 = math.exp %34 : vector<4x8x8xf32>
    %cst_5 = arith.constant dense<0.000000e+00> : vector<4x8xf32>
    %36 = vector.multi_reduction <add>, %35, %cst_5 [2] : vector<4x8x8xf32> to vector<4x8xf32>
    %37 = vector.shape_cast %36 : vector<4x8xf32> to vector<4x8x1xf32>
    %38 = tpu.reciprocal %37 : vector<4x8x1xf32> -> vector<4x8x1xf32>
    %39 = vector.broadcast %38 : vector<4x8x1xf32> to vector<4x8x8xf32>
    %40 = arith.mulf %35, %39 : vector<4x8x8xf32>
    "tpu.trace_start"() <{level = 10 : i32, message = "hts,hsc->htc"}> : () -> ()
    %cst_6 = arith.constant dense<0.000000e+00> : vector<4x8x8xf32>
    %41 = tpu.matmul %40, %29, %cst_6 {dimension_numbers = #tpu.dot_dimension_numbers<[2], [1], [1], [2], [0, 0, 0, 1, 1, 2], [0], [0]>} : vector<4x8x8xf32>, vector<4x8x8xf32>, vector<4x8x8xf32> -> vector<4x8x8xf32>
    "tpu.trace_stop"() : () -> ()
    %42 = vector.extract_strided_slice %41 {offsets = [0, 0, 0], sizes = [1, 8, 8], strides = [1, 1, 1]} : vector<4x8x8xf32> to vector<1x8x8xf32>
    %43 = vector.shape_cast %42 : vector<1x8x8xf32> to vector<8x8xf32>
    %44 = vector.extract_strided_slice %41 {offsets = [1, 0, 0], sizes = [1, 8, 8], strides = [1, 1, 1]} : vector<4x8x8xf32> to vector<1x8x8xf32>
    %45 = vector.shape_cast %44 : vector<1x8x8xf32> to vector<8x8xf32>
    %46 = vector.extract_strided_slice %41 {offsets = [2, 0, 0], sizes = [1, 8, 8], strides = [1, 1, 1]} : vector<4x8x8xf32> to vector<1x8x8xf32>
    %47 = vector.shape_cast %46 : vector<1x8x8xf32> to vector<8x8xf32>
    %48 = vector.extract_strided_slice %41 {offsets = [3, 0, 0], sizes = [1, 8, 8], strides = [1, 1, 1]} : vector<4x8x8xf32> to vector<1x8x8xf32>
    %49 = vector.shape_cast %48 : vector<1x8x8xf32> to vector<8x8xf32>
    %50 = tpu.concatenate %43, %45, %47, %49 in 1 : vector<8x8xf32>, vector<8x8xf32>, vector<8x8xf32>, vector<8x8xf32> -> vector<8x32xf32>
    %c0_7 = arith.constant 0 : index
    %c0_8 = arith.constant 0 : index
    %51 = vector.load %arg3[%c0_7, %c0_8] : memref<32x128xf32, #tpu.memory_space<vmem>>, vector<32x128xf32>
    %cst_9 = arith.constant dense<0.000000e+00> : vector<8x128xf32>
    %52 = tpu.matmul %50, %51, %cst_9 {dimension_numbers = #tpu.dot_dimension_numbers<[1], [0], [0], [1], [0, 0, 1, 1], [], []>} : vector<8x32xf32>, vector<32x128xf32>, vector<8x128xf32> -> vector<8x128xf32>
    %c0_10 = arith.constant 0 : index
    %c0_11 = arith.constant 0 : index
    %53 = vector.load %arg4[%c0_10, %c0_11] : memref<1x128xf32, #tpu.memory_space<vmem>>, vector<1x128xf32>
    %54 = vector.broadcast %53 : vector<1x128xf32> to vector<8x128xf32>
    %55 = arith.addf %52, %54 : vector<8x128xf32>
    %c0_12 = arith.constant 0 : index
    %c0_13 = arith.constant 0 : index
    %56 = vector.load %arg5[%c0_12, %c0_13] : memref<8x128xf32, #tpu.memory_space<vmem>>, vector<8x128xf32>
    tpu.vector_store %arg5[%c0_12, %c0_13], %55 {strides = array<i32>} : memref<8x128xf32, #tpu.memory_space<vmem>>, vector<8x128xf32>,
    return
  }
  func.func @transform_0(%arg0: i32) -> (i32, i32) {
    %c0_i32 = arith.constant 0 : i32
    %c0_i32_0 = arith.constant 0 : i32
    return %arg0, %c0_i32 : i32, i32
  }
  func.func @transform_1(%arg0: i32) -> (i32, i32) {
    %c0_i32 = arith.constant 0 : i32
    %c0_i32_0 = arith.constant 0 : i32
    %c0_i32_1 = arith.constant 0 : i32
    return %c0_i32, %c0_i32_0 : i32, i32
  }
  func.func @transform_2(%arg0: i32) -> (i32, i32) {
    %c0_i32 = arith.constant 0 : i32
    %c0_i32_0 = arith.constant 0 : i32
    %c0_i32_1 = arith.constant 0 : i32
    return %c0_i32, %c0_i32_0 : i32, i32
  }
  func.func @transform_3(%arg0: i32) -> (i32, i32) {
    %c0_i32 = arith.constant 0 : i32
    %c0_i32_0 = arith.constant 0 : i32
    %c0_i32_1 = arith.constant 0 : i32
    return %c0_i32, %c0_i32_0 : i32, i32
  }
  func.func @transform_4(%arg0: i32) -> (i32, i32) {
    %c0_i32 = arith.constant 0 : i32
    %c0_i32_0 = arith.constant 0 : i32
    return %arg0, %c0_i32 : i32, i32
  }
}

</mosaic_0001>

<bundles_post_ra>
// kernel: tpu_custom_call.1
= control target key start
LH: loop header
LB: loop body
LE: loop exit
PB: predicated region body
PF: predicated region fallthrough
CT: control target
= control target key end

     0   :  { %9 = vsyncpa [#allocation3], 0  ;;  %s1286_s0 = inlined_call_operand.hbm [shape: f32[16,128], index: 0, kind: input, shape index: {}]   ;;  %s1287_s1 = inlined_call_operand.hbm [shape: f32[128,128], index: 1, kind: input, shape index: {}]   ;;  %s1288_s2 = inlined_call_operand.hbm [shape: f32[32,128], index: 2, kind: input, shape index: {}]   ;;  %s1289_s3 = inlined_call_operand.vmem [shape: f32[1,128], index: 3, kind: input, shape index: {}]   ;;  %s1290_s4 = inlined_call_operand.hbm [shape: f32[16,128], index: 4, kind: output, shape index: {}]  }
   0x1   :  { %11 = vsyncpa [#allocation3 + $0x1], 0 }
   0x2   :  { %12 = vsyncpa [#allocation6], 0 }
   0x3   :  { %13 = vsyncpa [#allocation4], 0 }
   0x4   :  { %15 = vsyncpa [#allocation4 + $0x1], 0  ;;  %s1079_s15 = smov 0   ;;  %s1081_s16 = smov 0  }
   0x5   :  { %s1083_s17 = smov 0   ;;  %s1085_s18 = smov 0  }
   0x6 LB: > { %s152_s21 = sshll.u32 %s1287_s1, 4  ;;  %s1103_s22 = sadd.s32 4294967295, %s1040_s18   ;;  %s1040_s18 = sphi %s1085_s18, %s1303_s18   ;;  %s1036_s17 = sphi %s1083_s17, %s1302_s17   ;;  %s1032_s16 = sphi %s1081_s16, %s1301_s16   ;;  %s1028_s15 = sphi %s1079_s15, %s1300_s15   ;;  %s153_s21 = int_to_ptr.hbm [resolvable:$true] %s152_s21 }
   0x7   : > { %p753_p0 = scmp.ge.s32.totalorder %s1040_s18, 1  ;;  %p42_p1 = scmp.eq.s32.totalorder %s1103_s22, 0 }
   0x8   : > { %p141_p2 = scmp.lt.s32.totalorder %s1040_s18, 3  ;;  %s1042_s24 = smov [#allocation5]  }
   0x9   : > { %s154_s25 = sshll.u32 %s1042_s24, 4  ;;  %s166_s28 = sshll.u32 %s1288_s2, 4  ;;  %s155_s25 = int_to_ptr.vmem [resolvable:$true] %s154_s25  ;;  %s167_s28 = int_to_ptr.hbm [resolvable:$true] %s166_s28 }
   0xa   : > { %p1108_p3 = pnand %p753_p0, %p141_p2  ;;  %s1043_s29 = smov [#allocation7]  }
   0xb   : > { %s168_s30 = sshll.u32 %s1043_s29, 4  ;;  %s1044_s5 = smov 128   ;;  %s169_s30 = int_to_ptr.vmem [resolvable:$true] %s168_s30 }
   0xc   : > { %p793_p4 = pneg %p1108_p3  ;;  %s1045_s6 = smov 8  }
   0xd   : > { %s752_s7 = sadd.s32 4294967294, %s1040_s18   ;;  %s1122_s8 = sadd.s32 1, %s1040_s18  }
   0xe   : > { %p794_p6 = pnand %p793_p4, %p42_p1  ;;  %s25_s9 = ssub.s32 %s1040_s18, %s1122_s8 }
   0xf   : > { %s28_s10 = sadd.s32 1, %s1036_s17  ;;  %p26_p7 = scmp.eq.s32.totalorder %s25_s9, 0 }
  0x10   : > { %796 = dma.hbm_to_vmem [thread:$0]  (!%p794_p6), %s153_s21, 2048, %s155_s25, [#allocation6], %s1044_s5, %s1044_s5, %s1045_s6  }
  0x11   : > { %799 = dma.hbm_to_vmem [thread:$0]  (!%p794_p6), %s167_s28, 512, %s169_s30, [#allocation6], %s1044_s5, %s1044_s5, %s1045_s6  }
  0x12   : > { %p35_p8 = scmp.ne.s32.totalorder %s1036_s17, %s1032_s16  ;;  %p36_p9 = scmp.eq.s32.totalorder %s1040_s18, 0 }
  0x13   : > { %p41_p10 = scmp.ne.s32.totalorder %s1032_s16, %s1028_s15  ;;  %p128_p13 = scmp.eq.s32.totalorder %s1103_s22, 1 }
  0x14   : > { %s1133_s11 = scalar_select %p26_p7, %s1036_s17, %s28_s10  }
  0x15   : > { %p1135_p11 = por %p36_p9, %p35_p8  ;;  %p1141_p12 = por %p42_p1, %p41_p10 }
  0x16   : > { %p134_p0 = scmp.eq.s32.totalorder %s752_s7, 1  ;;  %p810_p2 = scmp.lt.s32.totalorder %s1040_s18, 2 }
  0x17   : > { %s185_s14 = sand.u32 1, %s1036_s17   ;;  %p1148_p4 = por %p128_p13, %p35_p8 }
  0x18   : > { %p1152_p6 = por %p134_p0, %p41_p10  ;;  %s757_s21 = sshll.u32 %s185_s14, 3 }
  0x19   : > { %s758_s24 = sshll.u32 %s1040_s18, 3  ;;  %s189_s28 = scalar_lea.vmem [#allocation2], %s757_s21 }
  0x1a   : > { %s193_s27 = scalar_lea.hbm %s1286_s0, %s758_s24  ;;  %s197_s29 = sshll.u32 %s189_s28, 4  ;;  %s198_s29 = int_to_ptr.vmem [resolvable:$true] %s197_s29 }
  0x1b   : > { %s195_s30 = sshll.u32 %s193_s27, 4  ;;  %p1162_p7 = pnand %p810_p2, %p1135_p11  ;;  %s196_s30 = int_to_ptr.hbm [resolvable:$true] %s195_s30 }
  0x1c   : > { %s186_s6 = scalar_lea.sflag [#allocation3], %s185_s14  ;;  %s940_s7 = sshra.s32 %s196_s30, 4  ;;  %s941_s7 = int_to_ptr.hbm [resolvable:$true] %s940_s7 }
  0x1d   : > { %s942_s9 = scalar_lea.hbm %s941_s7, 8  ;;  %p944_p9 = pneg %p1162_p7 }
  0x1e   : > { %p943_p8 = scmp.ne.s32.totalorder %s941_s7, %s942_s9  ;;  %s947_s24 = scalar_lea.hbm %s1286_s0, 16 }
  0x1f   : > { %p948_p11 = scmp.lt.s32.totalorder %s941_s7, %s1286_s0  ;;  %p949_p0 = scmp.lt.s32.totalorder %s947_s24, %s942_s9 }
  0x20   : > { %p945_p10 = pnand %p944_p9, %p943_p8 }
  0x21   : > { %p950_p2 = por %p949_p0, %p948_p11 }
  0x22   : > { %p946_p13 = pneg %p945_p10 }
  0x24   : > { %p951_p5 = pnand %p950_p2, %p946_p13 }
  0x26   : > { %954 = shalt.err (!%p951_p5)
}
  0x27   : > { %803 = dma.hbm_to_vmem [thread:$0]  (!%p1162_p7), %s196_s30, 128, %s198_s29, %s186_s6  }
  0x28   : > { %206 = sbr.rel (%p1108_p3) target bundleno = 1219 (0x4c3), region = 36  ;;  %s1179_s14 = sand.u32 (!%p1108_p3), 1, %s1032_s16  }
  0x29   : > { %s760_s26 = sshll.u32 (!%p1108_p3), %s1179_s14, 3  ;;  %s209_s27 = scalar_lea.sflag (!%p1108_p3), [#allocation3], %s1179_s14 }
  0x2a   : > { %s1185_s28 = scalar_lea.vmem (!%p1108_p3), [#allocation2], %s760_s26 }
  0x2d   : > { %1015 = dma.done.wait (%p1141_p12), %s209_s27, 128  }
  0x2e   : > { %1017 = vsyncadd (%p1141_p12), %s209_s27, 4294967168 }
  0x2f   : > { %1019 = dma.done.wait (%p42_p1), [#allocation6], 2560  }
  0x30   : > { %1021 = vsyncadd (%p42_p1), [#allocation6], 4294964736  ;;  %v264_v0 = vld [vmem:[#allocation5 + $0x78] sm:$0xff]  ;;  %v263_v1 = vld [vmem:[#allocation5 + $0x70] sm:$0xff]  ;;  %s1046_s23 = smov 104   ;;  %s1047_s13 = smov 120  }
  0x31   : > { %265 = vmatpush.msra.mxu0 %v264_v0  ;;  %v262_v2 = vld [vmem:[#allocation5 + $0x68] sm:$0xff]  ;;  %v261_v3 = vld [vmem:[#allocation5 + $0x60] sm:$0xff]  ;;  %v260_v4 = vld [vmem:[#allocation5 + $0x58] sm:$0xff]  ;;  %s1048_s29 = smov 96   ;;  %s1049_s30 = smov 112   ;;  %vm294_vm0 = vcmask 64512  }
  0x32   : > { %v259_v5 = vld [vmem:[#allocation5 + $0x50] sm:$0xff]  ;;  %v258_v6 = vld [vmem:[#allocation5 + $0x48] sm:$0xff]  ;;  %v257_v7 = vld [vmem:[#allocation5 + $0x40] sm:$0xff]  ;;  %s1050_s5 = smov 64   ;;  %s1051_s6 = smov 16  }
  0x33   : > { %266 = vmatpush.msra.mxu0 %v263_v1  ;;  %v256_v8 = vld [vmem:[#allocation5 + $0x38] sm:$0xff]  ;;  %v255_v9 = vld [vmem:[#allocation5 + $0x30] sm:$0xff]  ;;  %v254_v10 = vld [vmem:[#allocation5 + $0x28] sm:$0xff]  ;;  %s1052_s7 = smov 8   ;;  %s1053_s9 = smov 24  }
  0x34   : > { %v253_v11 = vld [vmem:[#allocation5 + $0x20] sm:$0xff]  ;;  %v252_v12 = vld [vmem:[#allocation5 + $0x18] sm:$0xff]  ;;  %v251_v13 = vld [vmem:[#allocation5 + $0x10] sm:$0xff]  ;;  %s778_s10 = sshll.u32 %s1103_s22, 3 }
  0x35   : > { %267 = vmatpush.msra.mxu0 %v262_v2  ;;  %v250_v14 = vld [vmem:[#allocation5 + $0x8] sm:$0xff]  ;;  %v249_v15 = vld [vmem:[#allocation5] sm:$0xff]  ;;  %v248_v16 = vld [vmem:[%s1185_s28] sm:$0xff]  ;;  %s658_s25 = scalar_lea.hbm %s1290_s4, %s778_s10  ;;  %s247_s28 = scalar_lea.vmem [#allocation8], %s760_s26 }
  0x37   : > { %268 = vmatpush.msra.mxu0 %v261_v3 }
  0x39   : > { %269 = vmatpush.msra.mxu0 %v260_v4 }
  0x3b   : > { %270 = vmatpush.msra.mxu0 %v259_v5 }
  0x3d   : > { %271 = vmatpush.msra.mxu0 %v258_v6 }
  0x3f   : > { %272 = vmatpush.msra.mxu0 %v257_v7 }
  0x41   : > { %273 = vmatpush.msra.mxu0 %v256_v8 }
  0x43   : > { %274 = vmatpush.msra.mxu0 %v255_v9 }
  0x45   : > { %275 = vmatpush.msra.mxu0 %v254_v10 }
  0x47   : > { %276 = vmatpush.msra.mxu0 %v253_v11 }
  0x49   : > { %277 = vmatpush.msra.mxu0 %v252_v12 }
  0x4b   : > { %278 = vmatpush.msra.mxu0 %v251_v13 }
  0x4d   : > { %279 = vmatpush.msra.mxu0 %v250_v14 }
  0x4f   : > { %280 = vmatpush.msra.mxu0 %v249_v15 }
  0x50   : > { %281 = vmatmul.f32.vlgmr.msra.gmra.mxu0 %v248_v16 }
  0xcd   : > { %v1196_v17 = vpop.f32.mrf.mxu0 }
  0xce   : > { %290 = vrot.lane.b32.xlu1 %v1196_v17, %s1046_s23  ;;  %286 = vrot.lane.b32.xlu0 %v1196_v17, %s1047_s13  ;;  %s660_s23 = sshll.u32 %s247_s28, 4  ;;  %s662_s13 = sshll.u32 %s658_s25, 4  ;;  %s661_s23 = int_to_ptr.vmem [resolvable:$true] %s660_s23  ;;  %s663_s13 = int_to_ptr.hbm [resolvable:$true] %s662_s13 }
  0xcf   : > { %s984_s22 = sshra.s32 %s663_s13, 4  ;;  %s985_s22 = int_to_ptr.hbm [resolvable:$true] %s984_s22 }
  0xd0   : > { %p991_p12 = scmp.lt.s32.totalorder %s985_s22, %s1290_s4 }
  0xd6   : > { %292 = vrot.lane.b32.xlu1 %v1196_v17, %s1048_s29  ;;  %288 = vrot.lane.b32.xlu0 %v1196_v17, %s1049_s30  ;;  %s986_s30 = scalar_lea.hbm %s985_s22, 8 }
  0xd7   : > { %p987_p1 = scmp.ne.s32.totalorder %s985_s22, %s986_s30 }
  0xd9   : > { %p988_p3 = pnand %p987_p1, %p1148_p4 }
  0xdb   : > { %p989_p5 = pneg %p988_p3 }
 0x140   : > { %v1202_v18 = vpop.permute.xlu1 %290  ;;  %v287_v19 = vpop.permute.xlu0 %286 }
 0x141   : > { %371 = vrot.lane.b32.xlu0 %v1202_v18, %s1048_s29  ;;  %319 = vrot.lane.b32.xlu2 %v287_v19, %s1048_s29  ;;  %v858_v53 = vpack.i.bf16 %v1202_v18, %v287_v19 }
 0x148   : > { %v293_v20 = vpop.permute.xlu1 %292  ;;  %v289_v21 = vpop.permute.xlu0 %288 }
 0x149   : > { %764 = vmatpush.xpose.msk.msra.mxu1 %vm294_vm0, %v293_v20  ;;  %345 = vrot.lane.b32.xlu2 %v289_v21, %s1048_s29  ;;  %s648_s29 = scalar_lea.sflag [#allocation4], %s1179_s14 }
 0x14c   : > { %765 = vmatmul.msk.f32.vlgmr.msra.gmra.mxu1 %vm294_vm0, %v1196_v17 }
 0x19b   : > { %v320_v22 = vpop.permute.xlu2 %319 }
 0x19c   : > { %766 = vmatpush.xpose.msk.msra.mxu2 %vm294_vm0, %v320_v22 }
 0x19f   : > { %767 = vmatmul.msk.f32.vlgmr.msra.gmra.mxu2 %vm294_vm0, %v287_v19 }
 0x1a3   : > { %v346_v23 = vpop.permute.xlu2 %345 }
 0x1a4   : > { %768 = vmatpush.xpose.msk.msra.mxu3 %vm294_vm0, %v346_v23 }
 0x1a7   : > { %769 = vmatmul.msk.f32.vlgmr.msra.gmra.mxu3 %vm294_vm0, %v289_v21 }
 0x1b3   : > { %v372_v24 = vpop.permute.xlu0 %371 }
 0x1b4   : > { %770 = vmatpush.xpose.msk.msrb.mxu1 %vm294_vm0, %v372_v24 }
 0x1b7   : > { %771 = vmatmul.msk.f32.vlgmr.msrb.gmra.mxu1 %vm294_vm0, %v1202_v18 }
 0x1c9   : > { %v316_v25 = vpop.f32.mrf.mxu1 }
 0x1ca   : > { %v397_v26 = vsel %vm294_vm0, %v316_v25, -inf }
 0x1cb   : > { %398 = vmax.xlane.f32.xlu1 %v397_v26 }
 0x222   : > { %v342_v27 = vpop.f32.mrf.mxu2 }
 0x223   : > { %v400_v28 = vsel %vm294_vm0, %v342_v27, -inf }
 0x224   : > { %401 = vmax.xlane.f32.xlu2 %v400_v28 }
 0x22a   : > { %v368_v29 = vpop.f32.mrf.mxu3 }
 0x22b   : > { %v403_v30 = vsel %vm294_vm0, %v368_v29, -inf }
 0x22c   : > { %404 = vmax.xlane.f32.xlu2 %v403_v30 }
 0x234   : > { %v394_v31 = vpop.f32.mrf.mxu1 }
 0x235   : > { %v406_v32 = vsel %vm294_vm0, %v394_v31, -inf }
 0x236   : > { %407 = vmax.xlane.f32.xlu0 %v406_v32 }
 0x23e   : > { %v399_v33 = vpop.xlane.xlu1 %398 }
 0x23f   : > { %v409_v34 = vsub.f32 %v316_v25, %v399_v33 }
 0x241   : > { %v413_v35 = vmul.f32 1.442695, %v409_v34 }
 0x243   : > { %864 = vpow2.f32 %v413_v35 }
 0x249   : > { %v865_v36 = vpop.eup %864 }
 0x24a   : > { %v421_v37 = vsel %vm294_vm0, %v865_v36, 0.0 }
 0x24b   : > { %422 = vadd.xlane.f32.xlu1 %v421_v37 }
 0x297   : > { %v402_v38 = vpop.xlane.xlu2 %401 }
 0x298   : > { %v410_v39 = vsub.f32 %v342_v27, %v402_v38 }
 0x29a   : > { %v415_v40 = vmul.f32 1.442695, %v410_v39 }
 0x29c   : > { %866 = vpow2.f32 %v415_v40 }
 0x29f   : > { %v405_v41 = vpop.xlane.xlu2 %404 }
 0x2a0   : > { %v411_v42 = vsub.f32 %v368_v29, %v405_v41 }
 0x2a2   : > { %v1220_v43 = vpop.eup %866  ;;  %v417_v44 = vmul.f32 1.442695, %v411_v42 }
 0x2a3   : > { %v424_v45 = vsel %vm294_vm0, %v1220_v43, 0.0 }
 0x2a4   : > { %868 = vpow2.f32 %v417_v44  ;;  %425 = vadd.xlane.f32.xlu2 %v424_v45 }
 0x2a9   : > { %v408_v46 = vpop.xlane.xlu0 %407 }
 0x2aa   : > { %v1224_v47 = vpop.eup %868  ;;  %v412_v48 = vsub.f32 %v394_v31, %v408_v46 }
 0x2ab   : > { %v427_v49 = vsel %vm294_vm0, %v1224_v47, 0.0 }
 0x2ac   : > { %v419_v50 = vmul.f32 1.442695, %v412_v48  ;;  %428 = vadd.xlane.f32.xlu1 %v427_v49  ;;  %v617_v49 = vld [vmem:[#allocation7 + $0x18] sm:$0xff] }
 0x2ae   : > { %870 = vpow2.f32 %v419_v50  ;;  %v615_v50 = vld [vmem:[#allocation7 + $0x8] sm:$0xff] }
 0x2b4   : > { %v1228_v51 = vpop.eup %870 }
 0x2b5   : > { %v430_v52 = vsel %vm294_vm0, %v1228_v51, 0.0 }
 0x2b6   : > { %431 = vadd.xlane.f32.xlu0 %v430_v52 }
 0x2bc   : > { %493 = vrot.lane.b32.xlu2 %v1196_v17, %s1050_s5 }
 0x2be   : > { %v423_v54 = vpop.xlane.xlu1 %422 }
 0x2bf   : > { %872 = vrcp.f32 %v423_v54  ;;  %v444_v60 = vand.u32 2147483648, %v423_v54  ;;  %vm438_vm2 = vweird.f32 %v423_v54  ;;  %v442_v61 = vand.u32 2147483647, %v423_v54 }
 0x2c1   : > { %v445_v0 = vor.u32 1.1754944e-38, %v444_v60  ;;  %vm443_vm4 = vcmp.eq.f32.partialorder %v442_v61, 8.507059e+37 }
 0x2c5   : > { %545 = vrot.lane.b32.xlu1 %v289_v21, %s1050_s5  ;;  %v873_v55 = vpop.eup %872 }
 0x2c6   : > { %v434_v56 = vmul.f32 %v873_v55, %v423_v54  ;;  %vm439_vm1 = vweird.f32 %v873_v55 }
 0x2c7   : > { %vm440_vm3 = vmor %vm438_vm2, %vm439_vm1  ;;  %vm610_vm2 = vcmask 130048  }
 0x2c8   : > { %v435_v57 = vsub.f32 1.0, %v434_v56 }
 0x2ca   : > { %859 = vrot.lane.b32.xlu0 %v858_v53, %s1050_s5  ;;  %v436_v58 = vmul.f32 %v873_v55, %v435_v57 }
 0x2cc   : > { %v437_v59 = vadd.f32 %v873_v55, %v436_v58  ;;  %v863_v58 = vld [vmem:[%s1289_s3] ss:$0 sm:$0xff] }
 0x2ce   : > { %v441_v63 = vsel %vm440_vm3, %v873_v55, %v437_v59  ;;  %vm612_vm3 = vcmask 195584  }
 0x2cf   : > { %v446_v1 = vsel %vm443_vm4, %v445_v0, %v441_v63  ;;  %vm622_vm4 = vcmask 261120  }
 0x2d0   : > { %v489_v4 = vmul.f32 %v865_v36, %v446_v1 }
 0x317   : > { %v426_v62 = vpop.xlane.xlu2 %425 }
 0x318   : > { %874 = vrcp.f32 %v426_v62  ;;  %v458_v24 = vand.u32 2147483648, %v426_v62  ;;  %vm452_vm11 = vweird.f32 %v426_v62  ;;  %v456_v27 = vand.u32 2147483647, %v426_v62 }
 0x31a   : > { %v459_v34 = vor.u32 1.1754944e-38, %v458_v24  ;;  %vm457_vm15 = vcmp.eq.f32.partialorder %v456_v27, 8.507059e+37 }
 0x31e   : > { %v875_v5 = vpop.eup %874 }
 0x31f   : > { %v429_v2 = vpop.xlane.xlu1 %428  ;;  %v494_v3 = vpop.permute.xlu2 %493  ;;  %v448_v8 = vmul.f32 %v875_v5, %v426_v62  ;;  %vm453_vm9 = vweird.f32 %v875_v5 }
 0x320   : > { %876 = vrcp.f32 %v429_v2  ;;  %514 = vmatpush.msrb.mxu2 %v494_v3  ;;  %v472_v14 = vand.u32 2147483648, %v429_v2  ;;  %vm466_vm6 = vweird.f32 %v429_v2  ;;  %v470_v15 = vand.u32 2147483647, %v429_v2  ;;  %vm1235_vm12 = vmor %vm452_vm11, %vm453_vm9 }
 0x321   : > { %772 = vmatmul.msk.f32.vlgmr.msrb.gmra.mxu2 %vm294_vm0, %v489_v4  ;;  %v449_v12 = vsub.f32 1.0, %v448_v8 }
 0x322   : > { %v473_v20 = vor.u32 1.1754944e-38, %v472_v14  ;;  %vm471_vm8 = vcmp.eq.f32.partialorder %v470_v15, 8.507059e+37 }
 0x323   : > { %v450_v17 = vmul.f32 %v875_v5, %v449_v12 }
 0x325   : > { %v451_v22 = vadd.f32 %v875_v5, %v450_v17 }
 0x326   : > { %v877_v6 = vpop.eup %876 }
 0x327   : > { %v462_v7 = vmul.f32 %v877_v6, %v429_v2  ;;  %vm467_vm5 = vweird.f32 %v877_v6  ;;  %v455_v33 = vsel %vm1235_vm12, %v875_v5, %v451_v22 }
 0x328   : > { %vm468_vm7 = vmor %vm466_vm6, %vm467_vm5  ;;  %v460_v38 = vsel %vm457_vm15, %v459_v34, %v455_v33 }
 0x329   : > { %v463_v9 = vsub.f32 1.0, %v462_v7  ;;  %v432_v10 = vpop.xlane.xlu0 %431  ;;  %v490_v42 = vmul.f32 %v1220_v43, %v460_v38  ;;  %v616_v43 = vld [vmem:[#allocation7 + $0x10] sm:$0xff] }
 0x32a   : > { %878 = vrcp.f32 %v432_v10  ;;  %v486_v26 = vand.u32 2147483648, %v432_v10  ;;  %v484_v28 = vand.u32 2147483647, %v432_v10  ;;  %vm480_vm13 = vweird.f32 %v432_v10 }
 0x32b   : > { %v464_v11 = vmul.f32 %v877_v6, %v463_v9 }
 0x32c   : > { %v487_v36 = vor.u32 1.1754944e-38, %v486_v26  ;;  %vm485_vm1 = vcmp.eq.f32.partialorder %v484_v28, 8.507059e+37 }
 0x32d   : > { %v465_v13 = vadd.f32 %v877_v6, %v464_v11 }
 0x32f   : > { %v469_v18 = vsel %vm468_vm7, %v877_v6, %v465_v13 }
 0x330   : > { %v879_v16 = vpop.eup %878  ;;  %v474_v23 = vsel %vm471_vm8, %v473_v20, %v469_v18 }
 0x331   : > { %v476_v19 = vmul.f32 %v879_v16, %v432_v10  ;;  %vm481_vm10 = vweird.f32 %v879_v16  ;;  %v491_v32 = vmul.f32 %v1224_v47, %v474_v23 }
 0x332   : > { %vm482_vm14 = vmor %vm480_vm13, %vm481_vm10 }
 0x333   : > { %v477_v21 = vsub.f32 1.0, %v476_v19 }
 0x335   : > { %v478_v25 = vmul.f32 %v879_v16, %v477_v21 }
 0x337   : > { %v479_v30 = vadd.f32 %v879_v16, %v478_v25  ;;  %v546_v31 = vpop.permute.xlu1 %545 }
 0x338   : > { %566 = vmatpush.msra.mxu1 %v546_v31 }
 0x339   : > { %v483_v35 = vsel %vm482_vm14, %v879_v16, %v479_v30  ;;  %774 = vmatmul.msk.f32.vlgmr.msra.gmra.mxu1 %vm294_vm0, %v491_v32 }
 0x33a   : > { %v488_v37 = vsel %vm485_vm1, %v487_v36, %v483_v35 }
 0x33b   : > { %v492_v44 = vmul.f32 %v1228_v51, %v488_v37  ;;  %v614_v51 = vld [vmem:[#allocation7] sm:$0xff] }
 0x33c   : > { %v860_v39 = vpop.permute.xlu0 %859 }
 0x33d   : > { %v862_v40 = vunpack.i.h.bf16 %v860_v39  ;;  %v861_v41 = vunpack.i.l.bf16 %v860_v39 }
 0x33f   : > { %540 = vmatpush.msrb.mxu3 %v861_v41  ;;  %592 = vmatpush.msra.mxu2 %v862_v40 }
 0x340   : > { %773 = vmatmul.msk.f32.vlgmr.msrb.gmra.mxu3 %vm294_vm0, %v490_v42  ;;  %775 = vmatmul.msk.f32.vlgmr.msra.gmra.mxu2 %vm294_vm0, %v492_v44 }
 0x341   : > { %638 = vmatpush.msra.mxu3 %v617_v49 }
 0x343   : > { %639 = vmatpush.msra.mxu3 %v616_v43 }
 0x345   : > { %640 = vmatpush.msra.mxu3 %v615_v50 }
 0x347   : > { %641 = vmatpush.msra.mxu3 %v614_v51 }
 0x3a4   : > { %v516_v46 = vpop.f32.mrf.mxu2 }
 0x3b6   : > { %v568_v45 = vpop.f32.mrf.mxu1 }
 0x3b7   : > { %602 = vrot.lane.b32.xlu2 %v568_v45, %s1051_s6 }
 0x3c3   : > { %v542_v47 = vpop.f32.mrf.mxu3  ;;  %v594_v48 = vpop.f32.mrf.mxu2 }
 0x3c4   : > { %598 = vrot.lane.b32.xlu0 %v542_v47, %s1052_s7  ;;  %606 = vrot.lane.b32.xlu1 %v594_v48, %s1053_s9  ;;  %s990_s7 = scalar_lea.hbm %s1290_s4, 16 }
 0x3c5   : > { %p992_p7 = scmp.lt.s32.totalorder %s990_s7, %s986_s30 }
 0x3c7   : > { %p993_p8 = por %p992_p7, %p991_p12 }
 0x3c9   : > { %p994_p9 = pnand %p993_p8, %p989_p5 }
 0x411   : > { %v603_v53 = vpop.permute.xlu2 %602 }
 0x436   : > { %v599_v52 = vpop.permute.xlu0 %598  ;;  %v607_v55 = vpop.permute.xlu1 %606 }
 0x437   : > { %v609_v54 = vsel %vm294_vm0, %v516_v46, %v599_v52 }
 0x438   : > { %v611_v56 = vsel %vm610_vm2, %v609_v54, %v603_v53 }
 0x439   : > { %v613_v57 = vsel %vm612_vm3, %v611_v56, %v607_v55 }
 0x43a   : > { %776 = vmatmul.msk.f32.vlgmr.msra.gmra.mxu3 %vm622_vm4, %v613_v57 }
 0x4bd   : > { %v643_v59 = vpop.f32.mrf.mxu3 }
 0x4be   : > { %v644_v60 = vadd.f32 %v863_v58, %v643_v59 }
 0x4c0   : > { %646 = vst [vmem:[%s247_s28] sm:$0xff] %v644_v60 }
 0x4c1   : > { %997 = shalt.err (!%p994_p9)
}
 0x4c2   : > { %791 = dma.vmem_to_hbm [thread:$0]  (%p1148_p4), %s661_s23, 128, %s663_s13, %s648_s29  }
 0x4c3 PF: > { %s674_s14 = sand.u32 1, %s1028_s15   ;;  %p1299_p10 = scmp.ge.s32.totalorder %s1040_s18, 2 }
 0x4c4   : > { %s675_s10 = scalar_lea.sflag [#allocation4], %s674_s14 }
 0x4c5   : > { %p805_p13 = pnand %p1299_p10, %p1152_p6 }
 0x4c7   : > { %p806_p11 = pneg %p805_p13 }
 0x4c9   : > { %1023 = dma.done.wait (%p806_p11), %s675_s10, 128  }
 0x4ca   : > { %1025 = vsyncadd (%p806_p11), %s675_s10, 4294967168  ;;  %p18_p0 = scmp.ge.s32.totalorder %s1122_s8, 4   ;;  %s1300_s15 = smov %s1032_s16 }
 0x4cb   : > { %s1301_s16 = smov %s1036_s17  ;;  %s1302_s17 = smov %s1133_s11 }
 0x4cc   : > { %s1303_s18 = smov %s1122_s8  ;;  %20 = sbr.rel (!%p18_p0) target bundleno = 6 (0x6), region = 89 }
 0x4d1   :  { %681 = vsyncpa [#allocation3], 1 }
 0x4d2   :  { %683 = vsyncpa [#allocation3 + $0x1], 1 }
 0x4d3   :  { %684 = vsyncpa [#allocation6], 1 }
 0x4d4   :  { %685 = vsyncpa [#allocation4], 1 }
 0x4d5   :  { %687 = vsyncpa [#allocation4 + $0x1], 1 }

</bundles_post_ra>
